<compile_context>
chip_gen: v7x
topology: tpu7x:2x2x1
jax: 0.10.0
libtpu: 0.0.40
codegen_flags: <defaults>
</compile_context>

<pallas_src>
import numpy as np
import jax
import jax.numpy as jnp
from jax.experimental import pallas as pl
from jax.experimental.pallas import tpu as pltpu


def _round_up(v, m):
    return (v + m - 1) // m * m


def _make_rochet_kernel(tau: float):
    def kernel(x_ref, pay_ref, w_ref, out_ref):
        # x tile in its native dtype; upcast in VMEM (no-op when already f32).
        x = x_ref[...].astype(jnp.float32)        # (TN, M)
        pay = pay_ref[...]                        # (1, M), broadcasts over rows
        w = w_ref[...]                            # (M, 128): col0 = pay+offsets, col1 = 1

        u = (x - pay) * tau                       # utility * tau            (VPU)
        m = jnp.max(u, axis=-1, keepdims=True)    # row max (only XLU reduce) (XLU)
        p = jnp.exp(u - m)                        # unnormalized softmax      (EUP)

        # Fuse both lane-axis sums into one MXU matmul:
        #   pw[:, 0] = sum_j p[:, j] * (pay + offsets)[j]   (numerator)
        #   pw[:, 1] = sum_j p[:, j]                        (softmax denominator)
        pw = jnp.dot(p, w, preferred_element_type=jnp.float32,
                     precision=jax.lax.Precision.HIGHEST)   # (TN, 128)
        numer = pw[:, 0:1]
        denom = pw[:, 1:2]
        # Exact divide: one op per row is negligible next to M exps per row,
        # and keeps full f32 accuracy (approx reciprocal would cost ~1e-4 rel).
        out_ref[...] = numer / denom              # (TN, 1)

    return kernel


def rochetnet_offsets_forward(x, pay_param, offsets, allocs=None, *,
                              tau=100.0, scale=1.0, block_n=1024,
                              null_idx=None):
    """x: [N, M], pay_param/offsets: [M], allocs: [M, num_items] (concrete).

    Pass `null_idx` explicitly if calling under jit with traced `allocs`.
    """
    N, M = x.shape

    # preprocess_action (plain JAX glue): scale pay and zero the null menu.
    if null_idx is None:
        # needs concrete allocs; otherwise supply null_idx directly.
        null_idx = int(np.where(np.asarray(allocs).sum(-1) == 0)[0][0])
    pay = pay_param.astype(jnp.float32) * scale
    pay = pay.at[null_idx].set(0.0)
    po = pay + offsets.astype(jnp.float32)
    pay_row = pay.reshape(1, M)

    # Resident MXU weight: one (TN,M)x(M,128) matmul yields both the softmax
    # numerator (column 0) and denominator (column 1).
    w = jnp.zeros((M, 128), jnp.float32)
    w = w.at[:, 0].set(po)
    w = w.at[:, 1].set(1.0)

    # Tile sizing: as many instance rows per grid step as fit a conservative
    # VMEM budget (double-buffered x tiles + resident pay/W kept well under
    # v5e's 16 MiB scoped default; v6e/v7x have more headroom).  Clamped to N
    # so tiny problems use a single small tile.
    xbytes = jnp.dtype(x.dtype).itemsize
    budget = 12 * 1024 * 1024 - 2 * (M * 128 * 4 + M * 4)
    cap = max(8, (budget // (2 * M * xbytes)) // 8 * 8)
    bn = min(int(block_n), int(cap), _round_up(N, 8))
    bn = max(8, (bn // 8) * 8)

    grid = (pl.cdiv(N, bn),)
    out = pl.pallas_call(
        _make_rochet_kernel(float(tau)),
        out_shape=jax.ShapeDtypeStruct((N, 1), jnp.float32),
        grid_spec=pltpu.PrefetchScalarGridSpec(
            num_scalar_prefetch=0,
            grid=grid,
            in_specs=[
                pl.BlockSpec((bn, M), lambda i: (i, 0)),    # x tile (streamed)
                pl.BlockSpec((1, M), lambda i: (0, 0)),     # pay row (resident)
                pl.BlockSpec((M, 128), lambda i: (0, 0)),   # MXU weight (resident)
            ],
            out_specs=pl.BlockSpec((bn, 1), lambda i: (i, 0)),
        ),
        compiler_params=pltpu.CompilerParams(
            dimension_semantics=("parallel",)),   # shards grid across v7x's 2 TCs
    )(x, pay_row, w)
    return out[:, 0]


def _reference_forward(x, pay_param, offsets, allocs, *, tau=100.0, scale=1.0):
    null_idx = int(np.where(np.asarray(allocs).sum(-1) == 0)[0][0])
    pay = pay_param * scale
    pay = pay.at[null_idx].set(0.0)
    utility = x - pay[None, :]
    probs = jax.nn.softmax(utility * tau, axis=-1)
    # HIGHEST precision so the reference matvec is f32-accurate like the kernel.
    return jnp.einsum('nm,m->n', probs, pay + offsets,
                      precision=jax.lax.Precision.HIGHEST)


if __name__ == "__main__":
    # Small shapes consistent with the module:
    #   num_instances = 8, num_menus = 128, num_items = 4
    N, M, ITEMS = 8, 128, 4
    tau, scale = 100.0, 1.0

    key = jax.random.PRNGKey(0)
    k_alloc, k_off, k_pay, k_x = jax.random.split(key, 4)

    # allocs buffer: binary menu allocations, row 0 is the null (all-zero) menu.
    allocs = (jax.random.uniform(k_alloc, (M, ITEMS)) > 0.5).astype(jnp.float32)
    allocs = allocs.at[0].set(0.0)

    # offsets buffer and pay parameter (deterministic, non-trivial init to
    # exercise the math; reset_parameters() in the module zeros pay).
    offsets = 0.1 * jax.random.normal(k_off, (M,), dtype=jnp.float32)
    pay_param = 0.5 * jax.random.normal(k_pay, (M,), dtype=jnp.float32)

    # x: [num_instances, num_menus]  (matches what forward's broadcasting implies)
    x = jax.random.uniform(k_x, (N, M), dtype=jnp.float32)

    out = rochetnet_offsets_forward(x, pay_param, offsets, allocs,
                                    tau=tau, scale=scale)
    out = jax.block_until_ready(out)

    ref = _reference_forward(x, pay_param, offsets, allocs, tau=tau, scale=scale)
    if not np.allclose(np.asarray(out), np.asarray(ref), rtol=1e-5, atol=1e-5):
        raise AssertionError("Pallas kernel does not match reference forward")

    print("KERNEL_OK")
</pallas_src>

<mosaic_0001>
module attributes {stable_mosaic.version = 11 : i64} {
  func.func @kernel(%arg0: i32, %arg1: memref<8x128xf32, #tpu.memory_space<vmem>>, %arg2: memref<1x128xf32, #tpu.memory_space<vmem>>, %arg3: memref<128x128xf32, #tpu.memory_space<vmem>>, %arg4: memref<8x1xf32, #tpu.memory_space<vmem>>) attributes {dimension_semantics = [#tpu.dimension_semantics<parallel>], iteration_bounds = array<i64: 1>, scalar_prefetch = 0 : i64, scratch_operands = 0 : i64, tpu.core_type = #tpu.core_type<tc>, window_params = [{transform_indices = @transform_0, window_bounds = array<i64: 8, 128>}, {pipeline_mode = #tpu.pipeline_mode<synchronous>, transform_indices = @transform_1, window_bounds = array<i64: 1, 128>}, {pipeline_mode = #tpu.pipeline_mode<synchronous>, transform_indices = @transform_2, window_bounds = array<i64: 128, 128>}, {transform_indices = @transform_3, window_bounds = array<i64: 8, 1>}]} {
    %c0 = arith.constant 0 : index
    %c0_0 = arith.constant 0 : index
    %0 = vector.load %arg1[%c0, %c0_0] : memref<8x128xf32, #tpu.memory_space<vmem>>, vector<8x128xf32>
    %c0_1 = arith.constant 0 : index
    %c0_2 = arith.constant 0 : index
    %1 = vector.load %arg2[%c0_1, %c0_2] : memref<1x128xf32, #tpu.memory_space<vmem>>, vector<1x128xf32>
    %c0_3 = arith.constant 0 : index
    %c0_4 = arith.constant 0 : index
    %2 = vector.load %arg3[%c0_3, %c0_4] : memref<128x128xf32, #tpu.memory_space<vmem>>, vector<128x128xf32>
    %3 = vector.broadcast %1 : vector<1x128xf32> to vector<8x128xf32>
    %4 = arith.subf %0, %3 : vector<8x128xf32>
    %cst = arith.constant 1.000000e+02 : f32
    %5 = vector.broadcast %cst : f32 to vector<8x128xf32>
    %6 = arith.mulf %4, %5 : vector<8x128xf32>
    %cst_5 = arith.constant dense<0xFF800000> : vector<8xf32>
    %7 = vector.multi_reduction <maximumf>, %6, %cst_5 [1] : vector<8x128xf32> to vector<8xf32>
    %8 = vector.shape_cast %7 : vector<8xf32> to vector<8x1xf32>
    %9 = vector.broadcast %8 : vector<8x1xf32> to vector<8x128xf32>
    %10 = arith.subf %6, %9 : vector<8x128xf32>
    %11 = math.exp %10 : vector<8x128xf32>
    %cst_6 = arith.constant dense<0.000000e+00> : vector<8x128xf32>
    %12 = tpu.matmul %11, %2, %cst_6 {dimension_numbers = #tpu.dot_dimension_numbers<[1], [0], [0], [1], [0, 0, 1, 1], [], []>, precision = #tpu.contract_precision<fp32>} : vector<8x128xf32>, vector<128x128xf32>, vector<8x128xf32> -> vector<8x128xf32>
    %13 = vector.extract_strided_slice %12 {offsets = [0, 0], sizes = [8, 1], strides = [1, 1]} : vector<8x128xf32> to vector<8x1xf32>
    %14 = vector.extract_strided_slice %12 {offsets = [0, 1], sizes = [8, 1], strides = [1, 1]} : vector<8x128xf32> to vector<8x1xf32>
    %15 = arith.divf %13, %14 : vector<8x1xf32>
    %c0_7 = arith.constant 0 : index
    %c0_8 = arith.constant 0 : index
    %16 = vector.load %arg4[%c0_7, %c0_8] : memref<8x1xf32, #tpu.memory_space<vmem>>, vector<8x1xf32>
    tpu.vector_store %arg4[%c0_7, %c0_8], %15 {strides = array<i32>} : memref<8x1xf32, #tpu.memory_space<vmem>>, vector<8x1xf32>,
    return
  }
  func.func @transform_0(%arg0: i32) -> (i32, i32) {
    %c0_i32 = arith.constant 0 : i32
    %c0_i32_0 = arith.constant 0 : i32
    return %arg0, %c0_i32 : i32, i32
  }
  func.func @transform_1(%arg0: i32) -> (i32, i32) {
    %c0_i32 = arith.constant 0 : i32
    %c0_i32_0 = arith.constant 0 : i32
    %c0_i32_1 = arith.constant 0 : i32
    return %c0_i32, %c0_i32_0 : i32, i32
  }
  func.func @transform_2(%arg0: i32) -> (i32, i32) {
    %c0_i32 = arith.constant 0 : i32
    %c0_i32_0 = arith.constant 0 : i32
    %c0_i32_1 = arith.constant 0 : i32
    return %c0_i32, %c0_i32_0 : i32, i32
  }
  func.func @transform_3(%arg0: i32) -> (i32, i32) {
    %c0_i32 = arith.constant 0 : i32
    %c0_i32_0 = arith.constant 0 : i32
    return %arg0, %c0_i32 : i32, i32
  }
}

</mosaic_0001>

<bundles_post_ra>
// kernel: tpu_custom_call.1
= control target key start
LH: loop header
LB: loop body
LE: loop exit
PB: predicated region body
PF: predicated region fallthrough
CT: control target
= control target key end

     0   :  { %8 = vsyncpa [#allocation3], 0  ;;  %s1560_s0 = inlined_call_operand.hbm [shape: f32[8,128], index: 0, kind: input, shape index: {}]   ;;  %s1561_s1 = inlined_call_operand.vmem [shape: f32[1,128], index: 1, kind: input, shape index: {}]   ;;  %s1562_s2 = inlined_call_operand.hbm [shape: f32[128,128], index: 2, kind: input, shape index: {}]   ;;  %s1563_s3 = inlined_call_operand.vmem [shape: f32[8,1], index: 3, kind: output, shape index: {}]  }
   0x1   :  { %9 = vsyncpa [#allocation5], 0  ;;  %s1252_s12 = smov [#allocation2]   ;;  %s1253_s14 = smov [#allocation4]  }
   0x2   :  { %s16_s13 = sshll.u32 %s1252_s12, 4  ;;  %s27_s15 = sshll.u32 %s1253_s14, 4  ;;  %s17_s13 = int_to_ptr.vmem [resolvable:$true] %s16_s13  ;;  %s1280_s15 = int_to_ptr.vmem [resolvable:$true] %s27_s15 }
   0x3   :  { %s1204_s18 = scalar_lea.hbm %s1560_s0, 128 }
   0x4   :  { %p1205_p0 = scmp.ne.s32.totalorder %s1560_s0, %s1204_s18  ;;  %p1208_p1 = scmp.lt.u32.totalorder %s1204_s18, %s1560_s0 }
   0x6   :  { %p1210_p2 = pnand %p1208_p1, %p1205_p0 }
   0x8   :  { %1213 = shalt.err (!%p1210_p2)
}
   0x9   :  { %s1214_s23 = scalar_lea.vmem %s17_s13, 128  ;;  %p1219_p4 = scmp.lt.s32.totalorder %s17_s13, %s17_s13 }
   0xa   :  { %p1215_p3 = scmp.ne.s32.totalorder %s17_s13, %s1214_s23  ;;  %p1220_p5 = scmp.lt.s32.totalorder %s1214_s23, %s1214_s23 }
   0xc   :  { %p1221_p6 = por %p1220_p5, %p1219_p4 }
   0xe   :  { %p1222_p7 = pnand %p1221_p6, %p1215_p3 }
  0x10   :  { %1225 = shalt.err (!%p1222_p7)
}
  0x11   :  { %19 = dma.hbm_to_vmem [thread:$0]  %s1560_s0, 128, %s17_s13, [#allocation3]  }
  0x12   :  { %s1226_s28 = scalar_lea.hbm %s1562_s2, 2048 }
  0x13   :  { %p1227_p8 = scmp.ne.s32.totalorder %s1562_s2, %s1226_s28  ;;  %p1230_p9 = scmp.lt.u32.totalorder %s1226_s28, %s1562_s2 }
  0x15   :  { %p1232_p10 = pnand %p1230_p9, %p1227_p8 }
  0x17   :  { %1235 = shalt.err (!%p1232_p10)
}
  0x18   :  { %s1236_s6 = scalar_lea.vmem %s1280_s15, 2048  ;;  %p1241_p12 = scmp.lt.s32.totalorder %s1280_s15, %s1280_s15 }
  0x19   :  { %p1237_p11 = scmp.ne.s32.totalorder %s1280_s15, %s1236_s6  ;;  %p1242_p13 = scmp.lt.s32.totalorder %s1236_s6, %s1236_s6 }
  0x1b   :  { %p1243_p0 = por %p1242_p13, %p1241_p12 }
  0x1d   :  { %p1244_p1 = pnand %p1243_p0, %p1237_p11 }
  0x1f   :  { %1247 = shalt.err (!%p1244_p1)
}
  0x20   :  { %s1254_s0 = smov 128   ;;  %s1255_s7 = smov 8  }
  0x21   :  { %33 = dma.hbm_to_vmem [thread:$0]  %s1562_s2, 2048, %s1280_s15, [#allocation5], %s1254_s0, %s1254_s0, %s1255_s7  }
  0x22   :  { %1248 = dma.done.wait [#allocation3], 128  }
  0x23   :  { %1249 = vsyncadd [#allocation3], 4294967168 }
  0x24   :  { %1250 = dma.done.wait [#allocation5], 2048  }
  0x25   :  { %1251 = vsyncadd [#allocation5], 4294965248  ;;  %v1256_v0 = vmov 0.0|0.0   ;;  %v40_v1 = vld [vmem:[#allocation2] sm:$0xff]  ;;  %v726_v2 = vld [vmem:[%s1561_s1] ss:$0 sm:$0xff] }
  0x26   :  { %1111 = vmatprep.subr.bf16.mxu0 %v1256_v0  ;;  %1039 = vmatprep.subr.bf16.mxu1 %v1256_v0  ;;  %v42_v3 = vld [vmem:[#allocation4] sm:$0xff]  ;;  %v64_v4 = vsub.f32 %v40_v1, %v726_v2  ;;  %v43_v5 = vld [vmem:[#allocation4 + $0x8] sm:$0xff]  ;;  %v44_v7 = vld [vmem:[#allocation4 + $0x10] sm:$0xff]  ;;  %vm1257_vm0 = vmmov 0   ;;  %v1258_v63 = vmov 0.0   ;;  %s1259_s1 = smov 127  }
  0x27   :  { %v72_v6 = vand.u32 4294901760, %v42_v3  ;;  %v45_v8 = vld [vmem:[#allocation4 + $0x18] sm:$0xff]  ;;  %v75_v9 = vand.u32 4294901760, %v43_v5  ;;  %v78_v10 = vand.u32 4294901760, %v44_v7  ;;  %v46_v12 = vld [vmem:[#allocation4 + $0x20] sm:$0xff]  ;;  %v47_v13 = vld [vmem:[#allocation4 + $0x28] sm:$0xff]  ;;  %966 = vmatprep.mubr.msk.f32.mxu0 %vm1257_vm0, %v1258_v63  ;;  %861 = vmatprep.mubr.msk.f32.mxu1 %vm1257_vm0, %v1258_v63 }
  0x28   :  { %v81_v11 = vand.u32 4294901760, %v45_v8  ;;  %v1316_v14 = vmul.f32 100.0, %v64_v4  ;;  %v84_v16 = vand.u32 4294901760, %v46_v12  ;;  %v87_v17 = vand.u32 4294901760, %v47_v13  ;;  %v48_v26 = vld [vmem:[#allocation4 + $0x30] sm:$0xff]  ;;  %v49_v27 = vld [vmem:[#allocation4 + $0x38] sm:$0xff] }
  0x29   :  { %v1318_v15 = vsub.f32 %v42_v3, %v72_v6  ;;  %v1320_v18 = vpack.c.bf16 %v75_v9, %v72_v6  ;;  %v1322_v19 = vsub.f32 %v43_v5, %v75_v9  ;;  %v1324_v20 = vsub.f32 %v44_v7, %v78_v10  ;;  %v50_v31 = vld [vmem:[#allocation4 + $0x40] sm:$0xff]  ;;  %v51_v32 = vld [vmem:[#allocation4 + $0x48] sm:$0xff]  ;;  %v52_v36 = vld [vmem:[#allocation4 + $0x50] sm:$0xff] }
  0x2a   :  { %66 = vmax.xlane.f32.xlu0 %v1316_v14  ;;  %v1327_v21 = vsub.f32 %v45_v8, %v81_v11  ;;  %v1329_v22 = vsub.f32 %v46_v12, %v84_v16  ;;  %v1331_v23 = vsub.f32 %v47_v13, %v87_v17  ;;  %v1335_v24 = vpack.c.bf16 %v81_v11, %v78_v10  ;;  %v53_v37 = vld [vmem:[#allocation4 + $0x58] sm:$0xff]  ;;  %v54_v41 = vld [vmem:[#allocation4 + $0x60] sm:$0xff]  ;;  %v55_v42 = vld [vmem:[#allocation4 + $0x68] sm:$0xff] }
  0x2b   :  { %1113 = vmatpush3.bf16.msra.mxu0 %v1320_v18  ;;  %1041 = vmatpush3.bf16.msra.mxu1 %v1320_v18  ;;  %v1341_v25 = vpack.c.bf16 %v87_v17, %v84_v16  ;;  %v90_v28 = vand.u32 4294901760, %v48_v26  ;;  %v93_v29 = vand.u32 4294901760, %v49_v27  ;;  %v96_v33 = vand.u32 4294901760, %v50_v31  ;;  %v56_v46 = vld [vmem:[#allocation4 + $0x70] sm:$0xff]  ;;  %v57_v47 = vld [vmem:[#allocation4 + $0x78] sm:$0xff] }
  0x2c   :  { %1114 = vmatprep.subr.bf16.mxu0 %v1256_v0  ;;  %1042 = vmatprep.subr.bf16.mxu1 %v1256_v0  ;;  %v99_v34 = vand.u32 4294901760, %v51_v32  ;;  %v102_v38 = vand.u32 4294901760, %v52_v36  ;;  %v105_v39 = vand.u32 4294901760, %v53_v37  ;;  %v108_v43 = vand.u32 4294901760, %v54_v41 }
  0x2d   :  { %v1349_v30 = vpack.c.bf16 %v93_v29, %v90_v28  ;;  %v111_v44 = vand.u32 4294901760, %v55_v42  ;;  %v114_v48 = vand.u32 4294901760, %v56_v46  ;;  %v117_v49 = vand.u32 4294901760, %v57_v47 }
  0x2e   :  { %v1355_v35 = vpack.c.bf16 %v99_v34, %v96_v33  ;;  %v1361_v40 = vpack.c.bf16 %v105_v39, %v102_v38  ;;  %v1373_v50 = vsub.f32 %v48_v26, %v90_v28  ;;  %v1375_v51 = vsub.f32 %v49_v27, %v93_v29 }
  0x2f   :  { %1116 = vmatpush3.bf16.msra.mxu0 %v1335_v24  ;;  %1044 = vmatpush3.bf16.msra.mxu1 %v1335_v24  ;;  %v1367_v45 = vpack.c.bf16 %v111_v44, %v108_v43  ;;  %v1377_v52 = vsub.f32 %v50_v31, %v96_v33  ;;  %v1379_v53 = vsub.f32 %v51_v32, %v99_v34  ;;  %v165_v61 = vand.u32 4294901760, %v1318_v15 }
  0x30   :  { %1117 = vmatprep.subr.bf16.mxu0 %v1256_v0  ;;  %1045 = vmatprep.subr.bf16.mxu1 %v1256_v0  ;;  %v1381_v54 = vsub.f32 %v52_v36, %v102_v38  ;;  %v1383_v55 = vsub.f32 %v53_v37, %v105_v39  ;;  %v1385_v56 = vsub.f32 %v54_v41, %v108_v43  ;;  %v172_v62 = vand.u32 4294901760, %v1322_v19 }
  0x31   :  { %v1387_v57 = vsub.f32 %v55_v42, %v111_v44  ;;  %v1389_v58 = vpack.c.bf16 %v117_v49, %v114_v48  ;;  %v1391_v59 = vsub.f32 %v56_v46, %v114_v48  ;;  %v1393_v60 = vsub.f32 %v57_v47, %v117_v49 }
  0x32   :  { %v1402_v1 = vpack.c.bf16 %v172_v62, %v165_v61  ;;  %v166_v2 = vsub.f32 %v1318_v15, %v165_v61  ;;  %v173_v3 = vsub.f32 %v1322_v19, %v172_v62  ;;  %v179_v6 = vand.u32 4294901760, %v1324_v20 }
  0x33   :  { %1119 = vmatpush3.bf16.msra.mxu0 %v1341_v25  ;;  %1047 = vmatpush3.bf16.msra.mxu1 %v1341_v25  ;;  %v186_v7 = vand.u32 4294901760, %v1327_v21  ;;  %v193_v16 = vand.u32 4294901760, %v1329_v22  ;;  %v200_v17 = vand.u32 4294901760, %v1331_v23  ;;  %v207_v33 = vand.u32 4294901760, %v1373_v50 }
  0x34   :  { %1120 = vmatprep.subr.bf16.mxu0 %v1256_v0  ;;  %1048 = vmatprep.subr.bf16.mxu1 %v1256_v0  ;;  %v167_v4 = vand.u32 4294901760, %v166_v2  ;;  %v174_v5 = vand.u32 4294901760, %v173_v3  ;;  %v180_v10 = vsub.f32 %v1324_v20, %v179_v6  ;;  %v214_v34 = vand.u32 4294901760, %v1375_v51 }
  0x35   :  { %v1413_v9 = vpack.c.bf16 %v186_v7, %v179_v6  ;;  %v187_v11 = vsub.f32 %v1327_v21, %v186_v7  ;;  %v1421_v27 = vpack.c.bf16 %v200_v17, %v193_v16  ;;  %v194_v28 = vsub.f32 %v1329_v22, %v193_v16 }
  0x36   :  { %v1411_v8 = vpack.c.bf16 %v174_v5, %v167_v4  ;;  %v181_v12 = vand.u32 4294901760, %v180_v10  ;;  %v201_v29 = vsub.f32 %v1331_v23, %v200_v17  ;;  %v1429_v37 = vpack.c.bf16 %v214_v34, %v207_v33 }
  0x37   :  { %1122 = vmatpush3.bf16.msra.mxu0 %v1349_v30  ;;  %1050 = vmatpush3.bf16.msra.mxu1 %v1349_v30  ;;  %v188_v13 = vand.u32 4294901760, %v187_v11  ;;  %v195_v31 = vand.u32 4294901760, %v194_v28  ;;  %v208_v38 = vsub.f32 %v1373_v50, %v207_v33  ;;  %v215_v39 = vsub.f32 %v1375_v51, %v214_v34 }
  0x38   :  { %1123 = vmatprep.subr.bf16.mxu0 %v1256_v0  ;;  %1051 = vmatprep.subr.bf16.mxu1 %v1256_v0  ;;  %v202_v32 = vand.u32 4294901760, %v201_v29  ;;  %v221_v43 = vand.u32 4294901760, %v1377_v52  ;;  %v228_v44 = vand.u32 4294901760, %v1379_v53  ;;  %v235_v2 = vand.u32 4294901760, %v1381_v54 }
  0x39   :  { %v1419_v26 = vpack.c.bf16 %v188_v13, %v181_v12  ;;  %v209_v41 = vand.u32 4294901760, %v208_v38  ;;  %v216_v42 = vand.u32 4294901760, %v215_v39  ;;  %v242_v3 = vand.u32 4294901760, %v1383_v55 }
  0x3a   :  { %v1427_v36 = vpack.c.bf16 %v202_v32, %v195_v31  ;;  %v1437_v47 = vpack.c.bf16 %v228_v44, %v221_v43  ;;  %v222_v48 = vsub.f32 %v1377_v52, %v221_v43  ;;  %v229_v49 = vsub.f32 %v1379_v53, %v228_v44 }
  0x3b   :  { %1125 = vmatpush3.bf16.msra.mxu0 %v1355_v35  ;;  %1053 = vmatpush3.bf16.msra.mxu1 %v1355_v35  ;;  %v1435_v46 = vpack.c.bf16 %v216_v42, %v209_v41  ;;  %v1151_v5 = vpack.c.bf16 %v242_v3, %v235_v2  ;;  %v236_v6 = vsub.f32 %v1381_v54, %v235_v2  ;;  %v249_v12 = vand.u32 4294901760, %v1385_v56 }
  0x3c   :  { %1126 = vmatprep.subr.bf16.mxu0 %v1256_v0  ;;  %1054 = vmatprep.subr.bf16.mxu1 %v1256_v0  ;;  %v223_v61 = vand.u32 4294901760, %v222_v48  ;;  %v230_v62 = vand.u32 4294901760, %v229_v49  ;;  %v243_v7 = vsub.f32 %v1383_v55, %v242_v3  ;;  %v256_v13 = vand.u32 4294901760, %v1387_v57 }
  0x3d   :  { %v237_v10 = vand.u32 4294901760, %v236_v6  ;;  %v250_v28 = vsub.f32 %v1385_v56, %v249_v12  ;;  %v263_v33 = vand.u32 4294901760, %v1391_v59  ;;  %v270_v34 = vand.u32 4294901760, %v1393_v60 }
  0x3e   :  { %v1076_v4 = vpack.c.bf16 %v230_v62, %v223_v61  ;;  %v244_v11 = vand.u32 4294901760, %v243_v7  ;;  %v1154_v17 = vpack.c.bf16 %v256_v13, %v249_v12  ;;  %v257_v29 = vsub.f32 %v1387_v57, %v256_v13 }
  0x3f   :  { %1128 = vmatpush3.bf16.msra.mxu0 %v1361_v40  ;;  %1056 = vmatpush3.bf16.msra.mxu1 %v1361_v40  ;;  %v251_v31 = vand.u32 4294901760, %v250_v28  ;;  %v1157_v39 = vpack.c.bf16 %v270_v34, %v263_v33  ;;  %v264_v41 = vsub.f32 %v1391_v59, %v263_v33  ;;  %v271_v42 = vsub.f32 %v1393_v60, %v270_v34 }
  0x40   :  { %1129 = vmatprep.subr.bf16.mxu0 %v1256_v0  ;;  %1057 = vmatprep.subr.bf16.mxu1 %v1256_v0  ;;  %v1079_v16 = vpack.c.bf16 %v244_v11, %v237_v10  ;;  %v258_v32 = vand.u32 4294901760, %v257_v29  ;;  %v1088_v49 = vpack.c.bf16 %v1322_v19, %v1318_v15  ;;  %v1091_v61 = vpack.c.bf16 %v1327_v21, %v1324_v20 }
  0x41   :  { %v265_v43 = vand.u32 4294901760, %v264_v41  ;;  %v272_v44 = vand.u32 4294901760, %v271_v42  ;;  %v1094_v62 = vpack.c.bf16 %v1331_v23, %v1329_v22  ;;  %v1097_v2 = vpack.c.bf16 %v1375_v51, %v1373_v50 }
  0x42   :  { %v1082_v38 = vpack.c.bf16 %v258_v32, %v251_v31  ;;  %v1100_v3 = vpack.c.bf16 %v1379_v53, %v1377_v52  ;;  %v1103_v6 = vpack.c.bf16 %v1383_v55, %v1381_v54  ;;  %v1106_v7 = vpack.c.bf16 %v1387_v57, %v1385_v56 }
  0x43   :  { %1131 = vmatpush3.bf16.msra.mxu0 %v1367_v45  ;;  %1059 = vmatpush3.bf16.msra.mxu1 %v1367_v45  ;;  %v1085_v48 = vpack.c.bf16 %v272_v44, %v265_v43  ;;  %v1109_v15 = vpack.c.bf16 %v1393_v60, %v1391_v59  ;;  %vm718_vm1 = vcmask 7168  }
  0x44   :  { %1132 = vmatprep.subr.bf16.mxu0 %v1256_v0  ;;  %1060 = vmatprep.subr.bf16.mxu1 %v1256_v0 }
  0x47   :  { %1134 = vmatpush3.bf16.msra.mxu0 %v1389_v58  ;;  %1062 = vmatpush3.bf16.msra.mxu1 %v1389_v58 }
  0x48   :  { %1135 = vmatprep.subr.bf16.mxu0 %v1256_v0  ;;  %1063 = vmatprep.subr.bf16.mxu1 %v1256_v0 }
  0xb7   :  { %v67_v19 = vpop.xlane.xlu0 %66 }
  0xb8   :  { %v68_v10 = vsub.f32 %v1316_v14, %v67_v19 }
  0xba   :  { %v69_v11 = vmul.f32 1.442695, %v68_v10 }
  0xbc   :  { %1200 = vpow2.f32 %v69_v11 }
  0xc6   :  { %v1201_v12 = vpop.eup %1200 }
  0xc7   :  { %v1470_v13 = vand.u32 4294901760, %v1201_v12 }
  0xc9   :  { %v1473_v28 = vsub.f32 %v1201_v12, %v1470_v13 }
  0xcb   :  { %v154_v29 = vand.u32 4294901760, %v1473_v28 }
  0xcd   :  { %967 = vmatmul.mubr.f32.vlgmr.msra.gmra.mrb[0].mxu0 %v154_v29  ;;  %v155_v31 = vsub.f32 %v1473_v28, %v154_v29 }
  0xce   :  { %1137 = vmatpush3.bf16.msra.mxu0 %v1402_v1  ;;  %1001 = vmatprep.mubr.msk.f32.mxu0 %vm1257_vm0, %v1258_v63 }
  0xcf   :  { %1138 = vmatprep.subr.bf16.mxu0 %v1256_v0  ;;  %v156_v14 = vand.u32 4294901760, %v155_v31 }
  0xd1   :  { %862 = vmatmul.mubr.f32.vlgmr.msra.gmra.mrb[0].mxu1 %v156_v14 }
  0xd2   :  { %1065 = vmatpush3.bf16.msra.mxu1 %v1411_v8  ;;  %1140 = vmatpush3.bf16.msra.mxu0 %v1413_v9 }
  0xd3   :  { %1066 = vmatprep.subr.bf16.mxu1 %v1256_v0  ;;  %1141 = vmatprep.subr.bf16.mxu0 %v1256_v0 }
  0xd4   :  { %896 = vmatprep.mubr.msk.f32.mxu1 %vm1257_vm0, %v1258_v63 }
  0xd6   :  { %1068 = vmatpush3.bf16.msra.mxu1 %v1419_v26  ;;  %1143 = vmatpush3.bf16.msra.mxu0 %v1421_v27 }
  0xd7   :  { %1069 = vmatprep.subr.bf16.mxu1 %v1256_v0  ;;  %1144 = vmatprep.subr.bf16.mxu0 %v1256_v0 }
  0xda   :  { %1071 = vmatpush3.bf16.msra.mxu1 %v1427_v36  ;;  %1146 = vmatpush3.bf16.msra.mxu0 %v1429_v37 }
  0xdb   :  { %1072 = vmatprep.subr.bf16.mxu1 %v1256_v0  ;;  %1147 = vmatprep.subr.bf16.mxu0 %v1256_v0 }
  0xde   :  { %1074 = vmatpush3.bf16.msra.mxu1 %v1435_v46  ;;  %1149 = vmatpush3.bf16.msra.mxu0 %v1437_v47 }
  0xdf   :  { %1075 = vmatprep.subr.bf16.mxu1 %v1256_v0  ;;  %1150 = vmatprep.subr.bf16.mxu0 %v1256_v0 }
  0xe2   :  { %1077 = vmatpush3.bf16.msra.mxu1 %v1076_v4  ;;  %1152 = vmatpush3.bf16.msra.mxu0 %v1151_v5 }
  0xe3   :  { %1078 = vmatprep.subr.bf16.mxu1 %v1256_v0  ;;  %1153 = vmatprep.subr.bf16.mxu0 %v1256_v0 }
  0xe6   :  { %1080 = vmatpush3.bf16.msra.mxu1 %v1079_v16  ;;  %1155 = vmatpush3.bf16.msra.mxu0 %v1154_v17 }
  0xe7   :  { %1081 = vmatprep.subr.bf16.mxu1 %v1256_v0  ;;  %1156 = vmatprep.subr.bf16.mxu0 %v1256_v0 }
  0xea   :  { %1083 = vmatpush3.bf16.msra.mxu1 %v1082_v38  ;;  %1158 = vmatpush3.bf16.msra.mxu0 %v1157_v39 }
  0xeb   :  { %1084 = vmatprep.subr.bf16.mxu1 %v1256_v0  ;;  %1159 = vmatprep.subr.bf16.mxu0 %v1256_v0 }
  0xed   :  { %1002 = vmatmul.mubr.f32.vlgmr.msra.gmra.mrb[0].mxu0 %v1470_v13 }
  0xee   :  { %1086 = vmatpush3.bf16.msra.mxu1 %v1085_v48  ;;  %1161 = vmatpush3.bf16.msra.mxu0 %v1320_v18 }
  0xef   :  { %1087 = vmatprep.subr.bf16.mxu1 %v1256_v0  ;;  %1162 = vmatprep.subr.bf16.mxu0 %v1256_v0 }
  0xf0   :  { %1036 = vmatprep.mubr.msk.f32.mxu0 %vm1257_vm0, %v1258_v63 }
  0xf1   :  { %897 = vmatmul.mubr.f32.vlgmr.msra.gmra.mrb[0].mxu1 %v1470_v13 }
  0xf2   :  { %1089 = vmatpush3.bf16.msra.mxu1 %v1088_v49  ;;  %1164 = vmatpush3.bf16.msra.mxu0 %v1335_v24 }
  0xf3   :  { %1090 = vmatprep.subr.bf16.mxu1 %v1256_v0  ;;  %1165 = vmatprep.subr.bf16.mxu0 %v1256_v0 }
  0xf4   :  { %931 = vmatprep.mubr.msk.f32.mxu1 %vm1257_vm0, %v1258_v63 }
  0xf6   :  { %1092 = vmatpush3.bf16.msra.mxu1 %v1091_v61  ;;  %1167 = vmatpush3.bf16.msra.mxu0 %v1341_v25 }
  0xf7   :  { %1093 = vmatprep.subr.bf16.mxu1 %v1256_v0  ;;  %1168 = vmatprep.subr.bf16.mxu0 %v1256_v0 }
  0xfa   :  { %1095 = vmatpush3.bf16.msra.mxu1 %v1094_v62  ;;  %1170 = vmatpush3.bf16.msra.mxu0 %v1349_v30 }
  0xfb   :  { %1096 = vmatprep.subr.bf16.mxu1 %v1256_v0  ;;  %1171 = vmatprep.subr.bf16.mxu0 %v1256_v0 }
  0xfe   :  { %1098 = vmatpush3.bf16.msra.mxu1 %v1097_v2  ;;  %1173 = vmatpush3.bf16.msra.mxu0 %v1355_v35 }
  0xff   :  { %1099 = vmatprep.subr.bf16.mxu1 %v1256_v0  ;;  %1174 = vmatprep.subr.bf16.mxu0 %v1256_v0 }
 0x102   :  { %1101 = vmatpush3.bf16.msra.mxu1 %v1100_v3  ;;  %1176 = vmatpush3.bf16.msra.mxu0 %v1361_v40 }
 0x103   :  { %1102 = vmatprep.subr.bf16.mxu1 %v1256_v0  ;;  %1177 = vmatprep.subr.bf16.mxu0 %v1256_v0 }
 0x106   :  { %1104 = vmatpush3.bf16.msra.mxu1 %v1103_v6  ;;  %1179 = vmatpush3.bf16.msra.mxu0 %v1367_v45 }
 0x107   :  { %1105 = vmatprep.subr.bf16.mxu1 %v1256_v0  ;;  %1180 = vmatprep.subr.bf16.mxu0 %v1256_v0 }
 0x10a   :  { %1107 = vmatpush3.bf16.msra.mxu1 %v1106_v7  ;;  %1182 = vmatpush3.bf16.msra.mxu0 %v1389_v58 }
 0x10b   :  { %1108 = vmatprep.subr.bf16.mxu1 %v1256_v0 }
 0x10d   :  { %1037 = vmatmul.mubr.f32.vlgmr.msra.gmra.mrb[0].mxu0 %v1470_v13 }
 0x10e   :  { %1110 = vmatpush3.bf16.msra.mxu1 %v1109_v15 }
 0x111   :  { %932 = vmatmul.mubr.f32.vlgmr.msra.gmra.mrb[0].mxu1 %v1473_v28 }
 0x1e0   :  { %v708_v18 = vpop.f32.mrb[0].mxu0 }
 0x1e1   :  { %v1038_v20 = vpop.f32.mrb[1].mxu0 }
 0x1e4   :  { %v413_v21 = vpop.f32.mrb[0].mxu1 }
 0x1e5   :  { %v1183_v22 = vadd.f32 %v708_v18, %v413_v21  ;;  %v933_v23 = vpop.f32.mrb[1].mxu1 }
 0x1e7   :  { %713 = vrot.lane.b32.xlu0 %v1183_v22, %s1259_s1 }
 0x259   :  { %v714_v24 = vpop.permute.xlu0 %713 }
 0x25a   :  { %1202 = vrcp.f32 %v714_v24 }
 0x264   :  { %v1203_v25 = vpop.eup %1202 }
 0x265   :  { %v717_v0 = vmul.f32 %v1203_v25, %v1183_v22 }
 0x267   :  { %719 = vst.msk [vmem:[%s1563_s3] sm:$0xff] %vm718_vm1, %v717_v0 }
 0x268   :  { %724 = vsyncpa [#allocation3], 1 }
 0x269   :  { %725 = vsyncpa [#allocation5], 1 }

</bundles_post_ra>
